<compile_context>
chip_gen: v7x
topology: tpu7x:2x2x1
jax: 0.10.0
libtpu: 0.0.40
codegen_flags: <defaults>
</compile_context>

<pallas_src>
import functools

import jax
import jax.numpy as jnp
from jax.experimental import pallas as pl
from jax.experimental.pallas import tpu as pltpu


# ---------------------------------------------------------------------------
# Kernel: two-and-a-bit MXU dots + bias adds + ReLU, one batch tile per step.
# ---------------------------------------------------------------------------
def reasoner_kernel(obs_ref, e_ref, w1pack_ref, w2pack_ref, y_ref,
                    *, obs_dim, e_dim, d_model):
    # Static slices of the packed resident weight blocks (zero-cost views).
    wjo = w1pack_ref[0:obs_dim, :]                                  # (obs_dim, d_model)
    wje = w1pack_ref[obs_dim:obs_dim + e_dim, :]                    # (e_dim,   d_model)
    b1 = w1pack_ref[obs_dim + e_dim:obs_dim + e_dim + 1, :]         # (1,       d_model)
    w2 = w2pack_ref[0:d_model, :]                                   # (d_model, y_dim)
    b2 = w2pack_ref[d_model:d_model + 1, :]                         # (1,       y_dim)

    # Joint layer folded into layer 1 (f32 MXU accumulation, f32 epilogue).
    h = (jnp.dot(obs_ref[...], wjo, preferred_element_type=jnp.float32)
         + jnp.dot(e_ref[...], wje, preferred_element_type=jnp.float32)
         + b1)
    h = jnp.maximum(h, 0.0)

    # Final layer (act_fn='none' -> identity); true-width output store.
    y = jnp.dot(h, w2, preferred_element_type=jnp.float32) + b2
    y_ref[...] = y.astype(y_ref.dtype)


# ---------------------------------------------------------------------------
# One-time parameter fold + pack (done at parameter-load time).
# ---------------------------------------------------------------------------
def prepare_params(params):
    """Fold JointLayer into the first MLP layer and pack weights+biases."""
    wo, we, bj, w1, b1, w2, b2 = params
    wjo = wo @ w1                                    # (obs_dim, d_model)
    wje = we @ w1                                    # (e_dim,   d_model)
    b1p = bj @ w1 + b1                               # (1,       d_model)
    w1pack = jnp.concatenate([wjo, wje, b1p], axis=0)   # (obs_dim+e_dim+1, d_model)
    w2pack = jnp.concatenate([w2, b2], axis=0)           # (d_model+1,       y_dim)
    return (w1pack, w2pack)


# ---------------------------------------------------------------------------
# Batch-tile selection: 1 step when small, >=2 balanced tiles for v7x megacore.
# ---------------------------------------------------------------------------
def _round_up(x, m):
    return ((x + m - 1) // m) * m


def _choose_batch_tile(batch, max_tb=4096, megacore_split_threshold=16):
    if batch <= megacore_split_threshold:
        return batch, 1                               # single grid step (1-TC chips)
    n = max(2, -(-batch // max_tb))                   # >=2 tiles so both v7x TCs engage
    tile = _round_up(-(-batch // n), 8)               # sublane-aligned tile
    n = -(-batch // tile)
    return tile, n


# ---------------------------------------------------------------------------
# Forward wrapper: batch-tiled pallas_call, resident packed weights, no extra
# HBM passes (no concat, no pad, no output slice).
# ---------------------------------------------------------------------------
def reasoner_forward(obs, e, folded_params, padding_mask=None,
                     max_tb=4096, megacore_split_threshold=16):
    # TODO(synk): padding_mask is only consumed by sequence-net variants of
    # `net` (GPT/transformer); the MLP path of the reference ignores it.
    del padding_mask
    w1pack, w2pack = folded_params
    B, obs_dim = obs.shape
    e_dim = e.shape[1]
    d_model = w1pack.shape[1]
    y_dim = w2pack.shape[1]
    assert w1pack.shape[0] == obs_dim + e_dim + 1
    assert w2pack.shape[0] == d_model + 1

    TB, n_tiles = _choose_batch_tile(B, max_tb, megacore_split_threshold)

    kernel = functools.partial(reasoner_kernel,
                               obs_dim=obs_dim, e_dim=e_dim, d_model=d_model)

    return pl.pallas_call(
        kernel,
        out_shape=jax.ShapeDtypeStruct((B, y_dim), jnp.float32),
        grid=(n_tiles,),
        in_specs=[
            pl.BlockSpec((TB, obs_dim), lambda i: (i, 0)),              # obs: batch-tiled
            pl.BlockSpec((TB, e_dim), lambda i: (i, 0)),                # e:   batch-tiled
            pl.BlockSpec((obs_dim + e_dim + 1, d_model),                # [Wj_obs;Wj_e;b1']
                         lambda i: (0, 0), pipeline_mode=pl.Buffered(1)),
            pl.BlockSpec((d_model + 1, y_dim),                          # [W2;b2]
                         lambda i: (0, 0), pipeline_mode=pl.Buffered(1)),
        ],
        out_specs=pl.BlockSpec((TB, y_dim), lambda i: (i, 0)),
        compiler_params=pltpu.CompilerParams(
            dimension_semantics=("parallel",)),       # v7x: 2 TCs shard the batch axis
    )(obs, e, w1pack, w2pack)


# ---------------------------------------------------------------------------
# Synthetic init + pure-JAX reference (unfused, original formulation).
# ---------------------------------------------------------------------------
def init_params(key, obs_dim, e_dim, d_model, y_dim):
    """Deterministic synthetic init (mirrors init_weights' xavier-style scaling)."""
    ks = jax.random.split(key, 4)

    def xavier(k, shape):
        fan_in, fan_out = shape
        scale = jnp.sqrt(2.0 / (fan_in + fan_out))
        return jax.random.normal(k, shape, jnp.float32) * scale

    wo = xavier(ks[0], (obs_dim, d_model))
    we = xavier(ks[1], (e_dim, d_model))
    bj = jnp.zeros((1, d_model), jnp.float32)
    w1 = xavier(ks[2], (d_model, d_model))
    b1 = jnp.zeros((1, d_model), jnp.float32)
    w2 = xavier(ks[3], (d_model, y_dim))
    b2 = jnp.zeros((1, y_dim), jnp.float32)
    return (wo, we, bj, w1, b1, w2, b2)


def reference_forward(obs, e, params):
    wo, we, bj, w1, b1, w2, b2 = params
    z = obs @ wo + e @ we + bj
    h = jnp.maximum(z @ w1 + b1, 0.0)
    return h @ w2 + b2


if __name__ == "__main__":
    # Shapes consistent with the module's config:
    #   obs_shape=(32,), e_dim=16, d_model=64, y_dim=8, batch=8
    B, OBS_DIM, E_DIM, D_MODEL, Y_DIM = 8, 32, 16, 64, 8

    key = jax.random.PRNGKey(0)
    k_obs, k_e, k_p, k_obs2, k_e2 = jax.random.split(key, 5)
    obs = jax.random.normal(k_obs, (B, OBS_DIM), jnp.float32)
    e = jax.random.normal(k_e, (B, E_DIM), jnp.float32)
    params = init_params(k_p, OBS_DIM, E_DIM, D_MODEL, Y_DIM)

    # One-time fold+pack (parameter-load time), then run the fused kernel.
    folded = jax.block_until_ready(prepare_params(params))
    fwd = jax.jit(functools.partial(reasoner_forward, folded_params=folded))

    # Case 1: deployed-size batch -> single grid step.
    y = jax.block_until_ready(fwd(obs, e))
    y_ref = reference_forward(obs, e, params)
    assert y.shape == (B, Y_DIM)
    # Fold changes fp32 summation order slightly -> modestly looser tolerance.
    assert jnp.allclose(y, y_ref, atol=1e-4, rtol=1e-4), (
        float(jnp.max(jnp.abs(y - y_ref))))

    # Case 2: batch not divisible by the tile -> exercises the 2-tile megacore
    # split and Pallas' ragged last block (no jnp.pad copy in the wrapper).
    B2 = 20
    obs2 = jax.random.normal(k_obs2, (B2, OBS_DIM), jnp.float32)
    e2 = jax.random.normal(k_e2, (B2, E_DIM), jnp.float32)
    y2 = jax.block_until_ready(fwd(obs2, e2))
    y2_ref = reference_forward(obs2, e2, params)
    assert y2.shape == (B2, Y_DIM)
    assert jnp.allclose(y2, y2_ref, atol=1e-4, rtol=1e-4), (
        float(jnp.max(jnp.abs(y2 - y2_ref))))

    print("KERNEL_OK")
</pallas_src>

<mosaic_0001>
module attributes {stable_mosaic.version = 11 : i64} {
  func.func @reasoner_kernel(%arg0: i32, %arg1: memref<8x32xf32, #tpu.memory_space<vmem>>, %arg2: memref<8x16xf32, #tpu.memory_space<vmem>>, %arg3: memref<49x64xf32, #tpu.memory_space<vmem>>, %arg4: memref<65x8xf32, #tpu.memory_space<vmem>>, %arg5: memref<8x8xf32, #tpu.memory_space<vmem>>) attributes {dimension_semantics = [#tpu.dimension_semantics<parallel>], iteration_bounds = array<i64: 1>, scalar_prefetch = 0 : i64, scratch_operands = 0 : i64, tpu.core_type = #tpu.core_type<tc>, window_params = [{transform_indices = @transform_0, window_bounds = array<i64: 8, 32>}, {transform_indices = @transform_1, window_bounds = array<i64: 8, 16>}, {pipeline_mode = #tpu.pipeline_mode<synchronous>, transform_indices = @transform_2, window_bounds = array<i64: 49, 64>}, {pipeline_mode = #tpu.pipeline_mode<synchronous>, transform_indices = @transform_3, window_bounds = array<i64: 65, 8>}, {transform_indices = @transform_4, window_bounds = array<i64: 8, 8>}]} {
    %c0 = arith.constant 0 : index
    %c0_0 = arith.constant 0 : index
    %0 = vector.load %arg3[%c0, %c0_0] : memref<49x64xf32, #tpu.memory_space<vmem>>, vector<32x64xf32>
    %c32 = arith.constant 32 : index
    %c0_1 = arith.constant 0 : index
    %1 = vector.load %arg3[%c32, %c0_1] : memref<49x64xf32, #tpu.memory_space<vmem>>, vector<16x64xf32>
    %c48 = arith.constant 48 : index
    %c0_2 = arith.constant 0 : index
    %2 = vector.load %arg3[%c48, %c0_2] : memref<49x64xf32, #tpu.memory_space<vmem>>, vector<1x64xf32>
    %c0_3 = arith.constant 0 : index
    %c0_4 = arith.constant 0 : index
    %3 = vector.load %arg4[%c0_3, %c0_4] : memref<65x8xf32, #tpu.memory_space<vmem>>, vector<64x8xf32>
    %c64 = arith.constant 64 : index
    %c0_5 = arith.constant 0 : index
    %4 = vector.load %arg4[%c64, %c0_5] : memref<65x8xf32, #tpu.memory_space<vmem>>, vector<1x8xf32>
    %c0_6 = arith.constant 0 : index
    %c0_7 = arith.constant 0 : index
    %5 = vector.load %arg1[%c0_6, %c0_7] : memref<8x32xf32, #tpu.memory_space<vmem>>, vector<8x32xf32>
    %cst = arith.constant dense<0.000000e+00> : vector<8x64xf32>
    %6 = tpu.matmul %5, %0, %cst {dimension_numbers = #tpu.dot_dimension_numbers<[1], [0], [0], [1], [0, 0, 1, 1], [], []>} : vector<8x32xf32>, vector<32x64xf32>, vector<8x64xf32> -> vector<8x64xf32>
    %c0_8 = arith.constant 0 : index
    %c0_9 = arith.constant 0 : index
    %7 = vector.load %arg2[%c0_8, %c0_9] : memref<8x16xf32, #tpu.memory_space<vmem>>, vector<8x16xf32>
    %cst_10 = arith.constant dense<0.000000e+00> : vector<8x64xf32>
    %8 = tpu.matmul %7, %1, %cst_10 {dimension_numbers = #tpu.dot_dimension_numbers<[1], [0], [0], [1], [0, 0, 1, 1], [], []>} : vector<8x16xf32>, vector<16x64xf32>, vector<8x64xf32> -> vector<8x64xf32>
    %9 = arith.addf %6, %8 : vector<8x64xf32>
    %10 = vector.broadcast %2 : vector<1x64xf32> to vector<8x64xf32>
    %11 = arith.addf %9, %10 : vector<8x64xf32>
    %cst_11 = arith.constant 0.000000e+00 : f32
    %12 = vector.broadcast %cst_11 : f32 to vector<8x64xf32>
    %13 = arith.maximumf %11, %12 : vector<8x64xf32>
    %cst_12 = arith.constant dense<0.000000e+00> : vector<8x8xf32>
    %14 = tpu.matmul %13, %3, %cst_12 {dimension_numbers = #tpu.dot_dimension_numbers<[1], [0], [0], [1], [0, 0, 1, 1], [], []>} : vector<8x64xf32>, vector<64x8xf32>, vector<8x8xf32> -> vector<8x8xf32>
    %15 = vector.broadcast %4 : vector<1x8xf32> to vector<8x8xf32>
    %16 = arith.addf %14, %15 : vector<8x8xf32>
    %c0_13 = arith.constant 0 : index
    %c0_14 = arith.constant 0 : index
    %17 = vector.load %arg5[%c0_13, %c0_14] : memref<8x8xf32, #tpu.memory_space<vmem>>, vector<8x8xf32>
    tpu.vector_store %arg5[%c0_13, %c0_14], %16 {strides = array<i32>} : memref<8x8xf32, #tpu.memory_space<vmem>>, vector<8x8xf32>,
    return
  }
  func.func @transform_0(%arg0: i32) -> (i32, i32) {
    %c0_i32 = arith.constant 0 : i32
    %c0_i32_0 = arith.constant 0 : i32
    return %arg0, %c0_i32 : i32, i32
  }
  func.func @transform_1(%arg0: i32) -> (i32, i32) {
    %c0_i32 = arith.constant 0 : i32
    %c0_i32_0 = arith.constant 0 : i32
    return %arg0, %c0_i32 : i32, i32
  }
  func.func @transform_2(%arg0: i32) -> (i32, i32) {
    %c0_i32 = arith.constant 0 : i32
    %c0_i32_0 = arith.constant 0 : i32
    %c0_i32_1 = arith.constant 0 : i32
    return %c0_i32, %c0_i32_0 : i32, i32
  }
  func.func @transform_3(%arg0: i32) -> (i32, i32) {
    %c0_i32 = arith.constant 0 : i32
    %c0_i32_0 = arith.constant 0 : i32
    %c0_i32_1 = arith.constant 0 : i32
    return %c0_i32, %c0_i32_0 : i32, i32
  }
  func.func @transform_4(%arg0: i32) -> (i32, i32) {
    %c0_i32 = arith.constant 0 : i32
    %c0_i32_0 = arith.constant 0 : i32
    return %arg0, %c0_i32 : i32, i32
  }
}

</mosaic_0001>

<bundles_post_ra>
// kernel: reasoner_forward.1
= control target key start
LH: loop header
LB: loop body
LE: loop exit
PB: predicated region body
PF: predicated region fallthrough
CT: control target
= control target key end

     0   :  { %9 = vsyncpa [#allocation3], 0  ;;  %s644_s0 = inlined_call_operand.hbm [shape: f32[8,32], index: 0, kind: input, shape index: {}]   ;;  %s645_s1 = inlined_call_operand.hbm [shape: f32[8,16], index: 1, kind: input, shape index: {}]   ;;  %s646_s2 = inlined_call_operand.hbm [shape: f32[49,64], index: 2, kind: input, shape index: {}]   ;;  %s647_s3 = inlined_call_operand.hbm [shape: f32[65,8], index: 3, kind: input, shape index: {}]   ;;  %s648_s4 = inlined_call_operand.hbm [shape: f32[8,8], index: 4, kind: output, shape index: {}]  }
   0x1   :  { %10 = vsyncpa [#allocation6], 0 }
   0x2   :  { %11 = vsyncpa [#allocation9], 0 }
   0x3   :  { %12 = vsyncpa [#allocation4], 0  ;;  %s546_s15 = smov [#allocation5]   ;;  %s547_s17 = smov [#allocation2]  }
   0x4   :  { %s29_s16 = sshll.u32 %s546_s15, 4  ;;  %s19_s18 = sshll.u32 %s547_s17, 4  ;;  %s30_s16 = int_to_ptr.vmem [resolvable:$true] %s29_s16  ;;  %s20_s18 = int_to_ptr.vmem [resolvable:$true] %s19_s18 }
   0x5   :  { %s428_s21 = scalar_lea.hbm %s645_s1, 128 }
   0x6   :  { %p429_p0 = scmp.ne.s32.totalorder %s645_s1, %s428_s21  ;;  %p432_p1 = scmp.lt.u32.totalorder %s428_s21, %s645_s1 }
   0x8   :  { %p434_p2 = pnand %p432_p1, %p429_p0 }
   0xa   :  { %437 = shalt.err (!%p434_p2)
}
   0xb   :  { %s438_s26 = scalar_lea.vmem %s30_s16, 128  ;;  %p443_p4 = scmp.lt.s32.totalorder %s30_s16, %s30_s16 }
   0xc   :  { %p439_p3 = scmp.ne.s32.totalorder %s30_s16, %s438_s26  ;;  %p444_p5 = scmp.lt.s32.totalorder %s438_s26, %s438_s26 }
   0xe   :  { %p445_p6 = por %p444_p5, %p443_p4 }
  0x10   :  { %p446_p7 = pnand %p445_p6, %p439_p3 }
  0x12   :  { %449 = shalt.err (!%p446_p7)
}
  0x13   :  { %32 = dma.hbm_to_vmem [thread:$0]  %s645_s1, 128, %s30_s16, [#allocation6]  }
  0x14   :  { %s450_s5 = scalar_lea.hbm %s644_s0, 128 }
  0x15   :  { %p451_p8 = scmp.ne.s32.totalorder %s644_s0, %s450_s5  ;;  %p454_p9 = scmp.lt.u32.totalorder %s450_s5, %s644_s0 }
  0x17   :  { %p456_p10 = pnand %p454_p9, %p451_p8 }
  0x19   :  { %459 = shalt.err (!%p456_p10)
}
  0x1a   :  { %s460_s10 = scalar_lea.vmem %s20_s18, 128  ;;  %p465_p12 = scmp.lt.s32.totalorder %s20_s18, %s20_s18 }
  0x1b   :  { %p461_p11 = scmp.ne.s32.totalorder %s20_s18, %s460_s10  ;;  %p466_p13 = scmp.lt.s32.totalorder %s460_s10, %s460_s10 }
  0x1d   :  { %p467_p0 = por %p466_p13, %p465_p12 }
  0x1f   :  { %p468_p1 = pnand %p467_p0, %p461_p11 }
  0x21   :  { %471 = shalt.err (!%p468_p1)
}
  0x22   :  { %22 = dma.hbm_to_vmem [thread:$0]  %s644_s0, 128, %s20_s18, [#allocation3]  }
  0x23   :  { %s548_s12 = smov [#allocation7]   ;;  %s472_s16 = scalar_lea.hbm %s646_s2, 896 }
  0x24   :  { %s38_s13 = sshll.u32 %s548_s12, 4  ;;  %p473_p2 = scmp.ne.s32.totalorder %s646_s2, %s472_s16  ;;  %s39_s13 = int_to_ptr.vmem [resolvable:$true] %s38_s13 }
  0x25   :  { %p476_p3 = scmp.lt.u32.totalorder %s472_s16, %s646_s2 }
  0x27   :  { %p478_p4 = pnand %p476_p3, %p473_p2 }
  0x29   :  { %481 = shalt.err (!%p478_p4)
}
  0x2a   :  { %s482_s22 = scalar_lea.vmem %s39_s13, 896  ;;  %p487_p6 = scmp.lt.s32.totalorder %s39_s13, %s39_s13 }
  0x2b   :  { %p483_p5 = scmp.ne.s32.totalorder %s39_s13, %s482_s22  ;;  %p488_p7 = scmp.lt.s32.totalorder %s482_s22, %s482_s22 }
  0x2d   :  { %p489_p8 = por %p488_p7, %p487_p6 }
  0x2f   :  { %p490_p9 = pnand %p489_p8, %p483_p5 }
  0x31   :  { %493 = shalt.err (!%p490_p9)
}
  0x32   :  { %s549_s0 = smov 128   ;;  %s550_s18 = smov 8  }
  0x33   :  { %44 = dma.hbm_to_vmem [thread:$0]  %s646_s2, 896, %s39_s13, [#allocation6], %s549_s0, %s549_s0, %s550_s18  }
  0x34   :  { %s551_s25 = smov [#allocation8]   ;;  %s494_s29 = scalar_lea.hbm %s647_s3, 1152 }
  0x35   :  { %s50_s26 = sshll.u32 %s551_s25, 4  ;;  %p495_p10 = scmp.ne.s32.totalorder %s647_s3, %s494_s29  ;;  %s51_s26 = int_to_ptr.vmem [resolvable:$true] %s50_s26 }
  0x36   :  { %p498_p11 = scmp.lt.u32.totalorder %s494_s29, %s647_s3 }
  0x38   :  { %p500_p12 = pnand %p498_p11, %p495_p10 }
  0x3a   :  { %503 = shalt.err (!%p500_p12)
}
  0x3b   :  { %s504_s8 = scalar_lea.vmem %s51_s26, 1152  ;;  %p509_p0 = scmp.lt.s32.totalorder %s51_s26, %s51_s26 }
  0x3c   :  { %p505_p13 = scmp.ne.s32.totalorder %s51_s26, %s504_s8  ;;  %p510_p1 = scmp.lt.s32.totalorder %s504_s8, %s504_s8 }
  0x3e   :  { %p511_p2 = por %p510_p1, %p509_p0 }
  0x40   :  { %p512_p3 = pnand %p511_p2, %p505_p13 }
  0x42   :  { %515 = shalt.err (!%p512_p3)
}
  0x43   :  { %56 = dma.hbm_to_vmem [thread:$0]  %s647_s3, 1152, %s51_s26, [#allocation9], %s549_s0, %s549_s0, %s550_s18  }
  0x44   :  { %538 = dma.done.wait [#allocation3], 128  }
  0x45   :  { %539 = vsyncadd [#allocation3], 4294967168 }
  0x46   :  { %540 = dma.done.wait [#allocation6], 1024  }
  0x47   :  { %541 = vsyncadd [#allocation6], 4294966272 }
  0x48   :  { %542 = dma.done.wait [#allocation9], 1152  }
  0x49   :  { %543 = vsyncadd [#allocation9], 4294966144  ;;  %v552_v0 = vmov 0.0|0.0   ;;  %vm553_vm0 = vmmov 0   ;;  %v554_v1 = vmov 0.0   ;;  %v73_v2 = vld [vmem:[#allocation7 + $0x20] sm:$0xff] }
  0x4a   :  { %397 = vmatprep.subr.bf16.mxu1 %v552_v0  ;;  %364 = vmatprep.mubr.msk.f32.mxu1 %vm553_vm0, %v554_v1  ;;  %v74_v3 = vld [vmem:[#allocation7 + $0x28] sm:$0xff]  ;;  %v69_v5 = vld [vmem:[#allocation7] sm:$0xff]  ;;  %v86_v7 = vld [vmem:[#allocation5] sm:$0xff]  ;;  %vm87_vm1 = vcmask 130048   ;;  %vm161_vm2 = vcmask 261120   ;;  %vm245_vm3 = vcmask 523264  }
  0x4b   :  { %406 = vmatprep.subr.bf16.mxu0 %v552_v0  ;;  %394 = vmatprep.mubr.msk.f32.mxu0 %vm553_vm0, %v554_v1  ;;  %v398_v4 = vpack.c.bf16 %v74_v3, %v73_v2  ;;  %v70_v6 = vld [vmem:[#allocation7 + $0x8] sm:$0xff]  ;;  %v71_v9 = vld [vmem:[#allocation7 + $0x10] sm:$0xff]  ;;  %v72_v10 = vld [vmem:[#allocation7 + $0x18] sm:$0xff]  ;;  %s555_s3 = smov [#allocation10]   ;;  %vm319_vm4 = vcmask 64512  }
  0x4c   :  { %v401_v8 = vpack.c.bf16 %v70_v6, %v69_v5  ;;  %v404_v11 = vpack.c.bf16 %v72_v10, %v71_v9  ;;  %v85_v12 = vld [vmem:[#allocation2] sm:$0xff]  ;;  %v76_v13 = vld [vmem:[#allocation8] sm:$0xff]  ;;  %v77_v14 = vld [vmem:[#allocation8 + $0x8] sm:$0xff]  ;;  %s327_s10 = sshll.u32 %s555_s3, 4  ;;  %s328_s10 = int_to_ptr.vmem [resolvable:$true] %s327_s10 }
  0x4d   :  { %399 = vmatpush3.bf16.msra.mxu1 %v398_v4  ;;  %v407_v15 = vpack.c.bf16 %v77_v14, %v76_v13  ;;  %v78_v16 = vld [vmem:[#allocation8 + $0x10] sm:$0xff]  ;;  %v79_v17 = vld [vmem:[#allocation8 + $0x18] sm:$0xff]  ;;  %v80_v19 = vld [vmem:[#allocation8 + $0x20] sm:$0xff]  ;;  %s516_s1 = scalar_lea.vmem %s328_s10, 128  ;;  %p521_p5 = scmp.lt.s32.totalorder %s328_s10, %s328_s10 }
  0x4e   :  { %400 = vmatprep.subr.bf16.mxu1 %v552_v0  ;;  %v410_v18 = vpack.c.bf16 %v79_v17, %v78_v16  ;;  %v81_v20 = vld [vmem:[#allocation8 + $0x28] sm:$0xff]  ;;  %v82_v22 = vld [vmem:[#allocation8 + $0x30] sm:$0xff]  ;;  %v83_v23 = vld [vmem:[#allocation8 + $0x38] sm:$0xff]  ;;  %p517_p4 = scmp.ne.s32.totalorder %s328_s10, %s516_s1  ;;  %p522_p6 = scmp.lt.s32.totalorder %s516_s1, %s516_s1 }
  0x4f   :  { %408 = vmatpush3.bf16.msra.mxu0 %v407_v15  ;;  %v413_v21 = vpack.c.bf16 %v81_v20, %v80_v19  ;;  %v416_v24 = vpack.c.bf16 %v83_v23, %v82_v22  ;;  %v340_v27 = vld [vmem:[#allocation7 + $0x30] ss:$0 sm:$0xff]  ;;  %v341_v33 = vld [vmem:[#allocation8 + $0x40] ss:$0 sm:$0xff] }
  0x50   :  { %365 = vmatmul.mubr.msk.f32.vlgmr.msra.gmra.mrb[0].mxu1 %vm87_vm1, %v86_v7  ;;  %409 = vmatprep.subr.bf16.mxu0 %v552_v0  ;;  %p523_p7 = por %p522_p6, %p521_p5 }
  0x51   :  { %402 = vmatpush3.bf16.msra.mxu1 %v401_v8  ;;  %375 = vmatprep.mubr.msk.f32.mxu1 %vm553_vm0, %v554_v1 }
  0x52   :  { %403 = vmatprep.subr.bf16.mxu1 %v552_v0  ;;  %p524_p8 = pnand %p523_p7, %p517_p4 }
  0x53   :  { %411 = vmatpush3.bf16.msra.mxu0 %v410_v18 }
  0x54   :  { %412 = vmatprep.subr.bf16.mxu0 %v552_v0 }
  0x55   :  { %405 = vmatpush3.bf16.msra.mxu1 %v404_v11 }
  0x57   :  { %414 = vmatpush3.bf16.msra.mxu0 %v413_v21 }
  0x58   :  { %376 = vmatmul.mubr.msk.f32.vlgmr.msra.gmra.mrb[2].mxu1 %vm161_vm2, %v85_v12  ;;  %415 = vmatprep.subr.bf16.mxu0 %v552_v0 }
  0x5b   :  { %417 = vmatpush3.bf16.msra.mxu0 %v416_v24 }
 0x123   :  { %v157_v25 = vpop.f32.mrb[0].mxu1 }
 0x124   :  { %v366_v26 = vpop.f32.mrb[1].mxu1 }
 0x12b   :  { %v231_v28 = vpop.f32.mrb[2].mxu1 }
 0x12c   :  { %v232_v29 = vadd.f32 %v231_v28, %v157_v25  ;;  %v377_v30 = vpop.f32.mrb[3].mxu1 }
 0x12e   :  { %v239_v31 = vadd.f32 %v340_v27, %v232_v29 }
 0x130   :  { %v240_v32 = vmax.f32 %v239_v31, 0.0 }
 0x132   :  { %395 = vmatmul.mubr.msk.f32.vlgmr.msra.gmra.mrb[0].mxu0 %vm245_vm3, %v240_v32 }
 0x205   :  { %v315_v34 = vpop.f32.mrb[0].mxu0 }
 0x206   :  { %v316_v35 = vadd.f32 %v341_v33, %v315_v34  ;;  %v396_v36 = vpop.f32.mrb[1].mxu0 }
 0x208   :  { %320 = vst.msk [vmem:[#allocation10] sm:$0xff] %vm319_vm4, %v316_v35 }
 0x209   :  { %527 = shalt.err (!%p524_p8)
}
 0x20a   :  { %s528_s13 = scalar_lea.hbm %s648_s4, 128 }
 0x20b   :  { %p529_p9 = scmp.ne.s32.totalorder %s648_s4, %s528_s13  ;;  %p532_p10 = scmp.lt.u32.totalorder %s528_s13, %s648_s4 }
 0x20d   :  { %p534_p11 = pnand %p532_p10, %p529_p9 }
 0x20f   :  { %537 = shalt.err (!%p534_p11)
}
 0x210   :  { %330 = dma.vmem_to_hbm [thread:$0]  %s328_s10, 128, %s648_s4, [#allocation4]  }
 0x211   :  { %544 = dma.done.wait [#allocation4], 128  }
 0x212   :  { %545 = vsyncadd [#allocation4], 4294967168 }
 0x213   :  { %334 = vsyncpa [#allocation3], 1 }
 0x214   :  { %335 = vsyncpa [#allocation6], 1 }
 0x215   :  { %336 = vsyncpa [#allocation9], 1 }
 0x216   :  { %337 = vsyncpa [#allocation4], 1 }

</bundles_post_ra>
